<compile_context>
chip_gen: v7x
topology: tpu7x:2x2x1
jax: 0.10.0
libtpu: 0.0.40
codegen_flags: <defaults>
</compile_context>

<pallas_src>
import functools
import math

import jax
import jax.numpy as jnp
from jax import lax
from jax.experimental import pallas as pl
from jax.experimental.pallas import tpu as pltpu

_LANES = 128
_SUB = 8


def _cdiv(a: int, b: int) -> int:
    return -(-a // b)


def _round_up(x: int, m: int) -> int:
    return _cdiv(x, m) * m


def _qloss_kernel(q_ref, g_ref, *rest, n, delta, g_mode, tr, tin, n_rows, acc_rows):
    """Accumulate sum(huber(g - q) * |tau - 1{g - q > 0}|) into a per-p partial.

    q_ref : (tr, c)                       predictions (lane-dense or (b, n))
    g_ref : (tr, c) / (tr, gl) / (tr, 1)  target, layout per g_mode
    e_ref : (gl, c)                       0/1 lane-expansion matrix ("packed" only)
    out   : (1, acc_rows, c)              running f32 partial, resident across t
    """
    if g_mode == "packed":
        e_ref, out_ref = rest
    else:
        (out_ref,) = rest

    p = pl.program_id(0)
    t = pl.program_id(1)
    c = q_ref.shape[-1]
    n_chunks = tr // tin

    @pl.when(t == 0)
    def _init():
        out_ref[...] = jnp.zeros_like(out_ref)

    # tau / (1 - tau) as lane constants: one (1, c) row, built once per step.
    lane = lax.broadcasted_iota(jnp.int32, (1, c), 1).astype(jnp.float32)
    frac = lane * (1.0 / float(n))
    tau = frac - jnp.floor(frac)          # (lane % n) / n   (frac < 1 in fallback)
    omt = 1.0 - tau

    if g_mode == "packed":
        ev = e_ref[...]                   # (gl, c) 0/1 matrix, resident in VMEM

    bi = p * pl.num_programs(1) + t       # intended row-block index
    valid = n_rows - bi * tr              # real rows in this block (may be <= 0)

    def g_chunk(start):
        if g_mode == "full":
            return g_ref[pl.ds(start, tin), :].astype(jnp.float32)        # (tin, c)
        if g_mode == "col":
            return g_ref[pl.ds(start, tin), :].astype(jnp.float32)        # (tin, 1)
        gp = g_ref[pl.ds(start, tin), :].astype(jnp.float32)              # (tin, gl)
        # Expand each target n times along lanes on the (otherwise idle) MXU;
        # hi/lo split keeps it ~f32 exact despite bf16 operand truncation.
        g_hi = gp.astype(jnp.bfloat16).astype(jnp.float32)
        g_lo = gp - g_hi
        return (jnp.dot(g_hi, ev, preferred_element_type=jnp.float32) +
                jnp.dot(g_lo, ev, preferred_element_type=jnp.float32))

    def chunk_hk(start):
        qv = q_ref[pl.ds(start, tin), :].astype(jnp.float32)
        gv = g_chunk(start)
        diff = gv - qv                                    # lane-broadcasts in "col"
        abs_d = jnp.abs(diff)
        clip = jnp.minimum(abs_d, delta)                  # Huber via min identity
        h = clip * (abs_d - 0.5 * clip)
        k = jnp.where(diff > 0, omt, tau)                 # |tau - 1{diff > 0}|
        return h * k

    def fold(hk):                                         # (tin, c) -> (acc_rows, c)
        if acc_rows == _SUB:
            return hk.reshape(-1, _SUB, c).sum(axis=0)    # layout-free reshape
        return hk.sum(axis=0, keepdims=True)              # tiny-input case only

    def step_sum(masked):
        def body(i, acc):
            start = i * tin
            if tin % _SUB == 0:
                start = pl.multiple_of(start, _SUB)
            hk = chunk_hk(start)
            if masked:
                row = lax.broadcasted_iota(jnp.int32, (tin, 1), 0) + start
                hk = jnp.where(row < valid, hk, 0.0)      # exact 0, NaN-safe
            return acc + fold(hk)
        init = jnp.zeros((acc_rows, c), jnp.float32)
        if n_chunks == 1:
            return body(0, init)
        return lax.fori_loop(0, n_chunks, body, init)

    @pl.when(valid >= tr)                                 # hot path: full block
    def _accum_full():
        out_ref[0] += step_sum(masked=False)

    @pl.when(jnp.logical_and(valid > 0, valid < tr))      # cold path: ragged tail
    def _accum_tail():
        out_ref[0] += step_sum(masked=True)
    # valid <= 0: spare (clamped) grid step when the block count is odd -> skip.


def _row_tiling(n_rows: int, c: int):
    """Pick (block rows tr, inner-chunk rows tin): ~4 MiB DMA blocks, ~0.5 MiB chunks."""
    c_pad = _round_up(max(c, 1), _LANES)
    tin_cap = max(_SUB, min(1024, ((512 * 1024) // (4 * c_pad)) // _SUB * _SUB))
    blocks = max(1, (4 * 1024 * 1024) // (4 * c_pad * tin_cap))
    if n_rows >= tin_cap:
        tin = tin_cap
        tr = min(blocks, n_rows // tin) * tin
    elif n_rows >= _SUB:
        tr = (n_rows // _SUB) * _SUB      # last block handles the <8-row tail
        tin = tr
    else:
        tr = n_rows                        # block row dim == full dim (allowed)
        tin = n_rows
    return tr, tin


def quantile_loss(q: jax.Array, g: jax.Array, delta: float = 1.0) -> jax.Array:
    """Pallas implementation of QuantileLoss.forward.  Returns a scalar f32."""
    q = jnp.asarray(q)
    g = jnp.asarray(g)

    n = q.shape[-1]
    b = math.prod(q.shape[:-1])
    total = b * n
    q2d = q.reshape(b, n)

    # How does g broadcast against q?
    if g.shape == q.shape:
        per_row, g_full2d = False, g.reshape(b, n)
    elif g.shape == q.shape[:-1] + (1,) or g.shape == q.shape[:-1]:
        per_row, g_rows = True, g.reshape(b)
    else:
        # Rare broadcast patterns: materialize (kept only for API parity).
        per_row, g_full2d = False, jnp.broadcast_to(g, q.shape).reshape(b, n)

    lane_dense = (n <= _LANES) and (_LANES % n == 0)
    gl = 0

    if lane_dense:
        # ---------- lane-dense flattened path (the common case, n = 8) ----------
        c = _LANES
        pad = (-total) % c                 # < 128 zeros; 0 for typical batch sizes
        q_flat = q2d.reshape(total)
        if pad:
            q_flat = jnp.pad(q_flat, (0, pad))
        n_rows = (total + pad) // c
        q_in = q_flat.reshape(n_rows, c)

        if per_row and n < _LANES:
            g_mode, gl = "packed", c // n
            g_flat = g_rows
            if n_rows * gl != b:
                g_flat = jnp.pad(g_flat, (0, n_rows * gl - b))
            g_in, g_cols = g_flat.reshape(n_rows, gl), gl
        elif per_row:                      # n == 128: one target per kernel row
            g_mode = "col"
            g_col = g_rows if n_rows == b else jnp.pad(g_rows, (0, n_rows - b))
            g_in, g_cols = g_col.reshape(n_rows, 1), 1
        else:
            g_mode = "full"
            g_flat = g_full2d.reshape(total)
            if pad:
                g_flat = jnp.pad(g_flat, (0, pad))
            g_in, g_cols = g_flat.reshape(n_rows, c), c
    else:
        # ---------- fallback: n does not divide 128; tile over batch rows --------
        c = n
        n_rows = b
        q_in = q2d
        if per_row:
            g_mode = "col"
            g_in, g_cols = g_rows.reshape(b, 1), 1
        else:
            g_mode = "full"
            g_in, g_cols = g_full2d, c

    tr, tin = _row_tiling(n_rows, c)
    acc_rows = _SUB if tin % _SUB == 0 else 1

    nb = _cdiv(n_rows, tr)                 # row blocks (last may be ragged)
    P = 2 if nb >= 2 else 1                # two independent partials -> v7x cores
    T = _cdiv(nb, P)

    def row_block(pi, ti):
        # Clamp so the (at most one) spare step on an odd block count re-reads
        # the previous block instead of DMA-ing out of bounds; the kernel skips
        # its contribution because `valid <= 0` there.
        return (jnp.minimum(pi * T + ti, nb - 1), 0)

    in_specs = [pl.BlockSpec((tr, c), row_block),
                pl.BlockSpec((tr, g_cols), row_block)]
    inputs = [q_in, g_in]
    if g_mode == "packed":
        expand = (jnp.arange(c, dtype=jnp.int32)[None, :] // n ==
                  jnp.arange(gl, dtype=jnp.int32)[:, None]).astype(jnp.float32)
        in_specs.append(pl.BlockSpec((gl, c), lambda pi, ti: (0, 0)))
        inputs.append(expand)

    # VMEM budget: double-buffered q/g blocks (g lane-pads to 128) plus per-chunk
    # f32 temporaries; keep the scoped limit well under v7x's 64 MiB physical.
    c_pad = _round_up(c, _LANES)
    g_pad = _round_up(g_cols, _LANES)
    est = (2 * tr * c_pad * q.dtype.itemsize + 2 * tr * g_pad * g_in.dtype.itemsize
           + 6 * tin * c_pad * 4 + (1 << 20))
    vmem_limit = int(min(48 * 2**20, max(32 * 2**20, 2 * est)))

    kernel = functools.partial(
        _qloss_kernel, n=n, delta=float(delta), g_mode=g_mode,
        tr=tr, tin=tin, n_rows=n_rows, acc_rows=acc_rows)

    partials = pl.pallas_call(
        kernel,
        out_shape=jax.ShapeDtypeStruct((P, acc_rows, c), jnp.float32),
        grid=(P, T),
        in_specs=in_specs,
        out_specs=pl.BlockSpec((1, acc_rows, c), lambda pi, ti: (pi, 0, 0)),
        compiler_params=pltpu.CompilerParams(
            dimension_semantics=("parallel", "arbitrary"),
            vmem_limit_bytes=vmem_limit),
    )(*inputs)

    # Padded lanes / masked rows contribute exactly 0; divide by the true count.
    return jnp.sum(partials) / float(total)


def _reference(q, g, delta=1.0):
    q = jnp.asarray(q, jnp.float32)
    g = jnp.broadcast_to(jnp.asarray(g, jnp.float32), q.shape)
    n = q.shape[-1]
    tau = (jnp.arange(n, dtype=jnp.float32) / n)[None, :]
    diff = g - q
    abs_d = jnp.abs(diff)
    h = jnp.where(abs_d < delta, 0.5 * diff * diff, delta * (abs_d - 0.5 * delta))
    k = jnp.abs(tau - (diff > 0).astype(jnp.float32))
    return jnp.mean(h * k)


if __name__ == "__main__":
    key = jax.random.PRNGKey(0)
    k1, k2, k3, k4, k5, k6, k7, k8 = jax.random.split(key, 8)

    # Case 1: [B, 1] target broadcast over n_quantiles (the module's typical use).
    B, N = 2, 8
    q1 = jax.random.normal(k1, (B, N), dtype=jnp.float32)
    g1 = jax.random.normal(k2, (B, 1), dtype=jnp.float32)
    out1 = quantile_loss(q1, g1, delta=1.0)
    jax.block_until_ready(out1)
    ref1 = _reference(q1, g1)
    assert jnp.allclose(out1, ref1, atol=1e-5, rtol=1e-5), (out1, ref1)

    # Case 2: elementwise target, element count not 128-aligned (lane-pad path).
    B2, N2 = 30, 8
    q2 = jax.random.normal(k3, (B2, N2), dtype=jnp.float32)
    g2 = jax.random.normal(k4, (B2, N2), dtype=jnp.float32)
    out2 = quantile_loss(q2, g2, delta=1.0)
    jax.block_until_ready(out2)
    ref2 = _reference(q2, g2)
    assert jnp.allclose(out2, ref2, atol=1e-5, rtol=1e-5), (out2, ref2)

    # Case 3: larger per-row case -> multiple row blocks, P=2 partials, and the
    # ragged last block exercising the in-kernel tail mask + MXU expansion.
    B3, N3 = 1000, 8
    q3 = jax.random.normal(k5, (B3, N3), dtype=jnp.float32)
    g3 = jax.random.normal(k6, (B3, 1), dtype=jnp.float32)
    out3 = quantile_loss(q3, g3, delta=1.0)
    jax.block_until_ready(out3)
    ref3 = _reference(q3, g3)
    assert jnp.allclose(out3, ref3, atol=2e-5, rtol=2e-4), (out3, ref3)

    # Case 4: n that does not divide 128 (fallback 2-D path, "col" target mode).
    B4, N4 = 20, 6
    q4 = jax.random.normal(k7, (B4, N4), dtype=jnp.float32)
    g4 = jax.random.normal(k8, (B4, 1), dtype=jnp.float32)
    out4 = quantile_loss(q4, g4, delta=1.0)
    jax.block_until_ready(out4)
    ref4 = _reference(q4, g4)
    assert jnp.allclose(out4, ref4, atol=1e-5, rtol=1e-5), (out4, ref4)

    print("KERNEL_OK")
</pallas_src>

<mosaic_0001>
module attributes {stable_mosaic.version = 11 : i64} {
  func.func @_qloss_kernel(%arg0: i32, %arg1: i32, %arg2: memref<1x128xf32, #tpu.memory_space<vmem>>, %arg3: memref<1x16xf32, #tpu.memory_space<vmem>>, %arg4: memref<16x128xf32, #tpu.memory_space<vmem>>, %arg5: memref<1x1x128xf32, #tpu.memory_space<vmem>>) attributes {dimension_semantics = [#tpu.dimension_semantics<parallel>, #tpu.dimension_semantics<arbitrary>], iteration_bounds = array<i64: 1, 1>, scalar_prefetch = 0 : i64, scratch_operands = 0 : i64, tpu.core_type = #tpu.core_type<tc>, window_params = [{transform_indices = @transform_0, window_bounds = array<i64: 1, 128>}, {transform_indices = @transform_1, window_bounds = array<i64: 1, 16>}, {pipeline_mode = #tpu.pipeline_mode<synchronous>, transform_indices = @transform_2, window_bounds = array<i64: 16, 128>}, {transform_indices = @transform_3, window_bounds = array<i64: 1, 1, 128>}]} {
    %c0_i32 = arith.constant 0 : i32
    %0 = arith.cmpi eq, %arg1, %c0_i32 : i32
    %1 = arith.extui %0 : i1 to i32
    %c0_i32_0 = arith.constant 0 : i32
    %2 = arith.cmpi ne, %1, %c0_i32_0 : i32
    scf.if %2 {
      %cst_10 = arith.constant 0.000000e+00 : f32
      %24 = vector.broadcast %cst_10 : f32 to vector<1x1x128xf32>
      %c0_11 = arith.constant 0 : index
      %c0_12 = arith.constant 0 : index
      %c0_13 = arith.constant 0 : index
      %25 = vector.load %arg5[%c0_11, %c0_12, %c0_13] : memref<1x1x128xf32, #tpu.memory_space<vmem>>, vector<1x1x128xf32>
      tpu.vector_store %arg5[%c0_11, %c0_12, %c0_13], %24 {strides = array<i32>} : memref<1x1x128xf32, #tpu.memory_space<vmem>>, vector<1x1x128xf32>,
    } else {
    }
    %3 = tpu.iota {dimensions = array<i32: 1>} : vector<1x128xi32>
    %4 = arith.sitofp %3 : vector<1x128xi32> to vector<1x128xf32>
    %cst = arith.constant 1.250000e-01 : f32
    %5 = vector.broadcast %cst : f32 to vector<1x128xf32>
    %6 = arith.mulf %4, %5 : vector<1x128xf32>
    %7 = math.floor %6 : vector<1x128xf32>
    %8 = arith.subf %6, %7 : vector<1x128xf32>
    %cst_1 = arith.constant 1.000000e+00 : f32
    %9 = vector.broadcast %cst_1 : f32 to vector<1x128xf32>
    %10 = arith.subf %9, %8 : vector<1x128xf32>
    %c0 = arith.constant 0 : index
    %c0_2 = arith.constant 0 : index
    %11 = vector.load %arg4[%c0, %c0_2] : memref<16x128xf32, #tpu.memory_space<vmem>>, vector<16x128xf32>
    %c1_i32 = arith.constant 1 : i32
    %12 = arith.muli %arg0, %c1_i32 : i32
    %13 = arith.addi %12, %arg1 : i32
    %c1_i32_3 = arith.constant 1 : i32
    %14 = arith.muli %13, %c1_i32_3 : i32
    %c1_i32_4 = arith.constant 1 : i32
    %15 = arith.subi %c1_i32_4, %14 : i32
    %c1_i32_5 = arith.constant 1 : i32
    %16 = arith.cmpi sge, %15, %c1_i32_5 : i32
    %17 = arith.extui %16 : i1 to i32
    %c0_i32_6 = arith.constant 0 : i32
    %18 = arith.cmpi ne, %17, %c0_i32_6 : i32
    scf.if %18 {
      %c0_10 = arith.constant 0 : index
      %c0_11 = arith.constant 0 : index
      %c0_12 = arith.constant 0 : index
      %24 = vector.load %arg5[%c0_10, %c0_11, %c0_12] : memref<1x1x128xf32, #tpu.memory_space<vmem>>, vector<1x1x128xf32>
      %25 = vector.shape_cast %24 : vector<1x1x128xf32> to vector<1x128xf32>
      %cst_13 = arith.constant 0.000000e+00 : f32
      %26 = vector.broadcast %cst_13 : f32 to vector<1x128xf32>
      %c0_14 = arith.constant 0 : index
      %c0_15 = arith.constant 0 : index
      %27 = vector.load %arg2[%c0_14, %c0_15] : memref<1x128xf32, #tpu.memory_space<vmem>>, vector<1x128xf32>
      %c0_16 = arith.constant 0 : index
      %c0_17 = arith.constant 0 : index
      %28 = vector.load %arg3[%c0_16, %c0_17] : memref<1x16xf32, #tpu.memory_space<vmem>>, vector<1x16xf32>
      %29 = arith.truncf %28 : vector<1x16xf32> to vector<1x16xbf16>
      %30 = arith.extf %29 : vector<1x16xbf16> to vector<1x16xf32>
      %31 = arith.subf %28, %30 : vector<1x16xf32>
      %cst_18 = arith.constant dense<0.000000e+00> : vector<1x128xf32>
      %32 = tpu.matmul %30, %11, %cst_18 {dimension_numbers = #tpu.dot_dimension_numbers<[1], [0], [0], [1], [0, 0, 1, 1], [], []>} : vector<1x16xf32>, vector<16x128xf32>, vector<1x128xf32> -> vector<1x128xf32>
      %cst_19 = arith.constant dense<0.000000e+00> : vector<1x128xf32>
      %33 = tpu.matmul %31, %11, %cst_19 {dimension_numbers = #tpu.dot_dimension_numbers<[1], [0], [0], [1], [0, 0, 1, 1], [], []>} : vector<1x16xf32>, vector<16x128xf32>, vector<1x128xf32> -> vector<1x128xf32>
      %34 = arith.addf %32, %33 : vector<1x128xf32>
      %35 = arith.subf %34, %27 : vector<1x128xf32>
      %36 = math.absf %35 : vector<1x128xf32>
      %cst_20 = arith.constant 1.000000e+00 : f32
      %37 = vector.broadcast %cst_20 : f32 to vector<1x128xf32>
      %38 = arith.minimumf %36, %37 : vector<1x128xf32>
      %cst_21 = arith.constant 5.000000e-01 : f32
      %39 = vector.broadcast %cst_21 : f32 to vector<1x128xf32>
      %40 = arith.mulf %39, %38 : vector<1x128xf32>
      %41 = arith.subf %36, %40 : vector<1x128xf32>
      %42 = arith.mulf %38, %41 : vector<1x128xf32>
      %cst_22 = arith.constant 0.000000e+00 : f32
      %43 = vector.broadcast %cst_22 : f32 to vector<1x128xf32>
      %44 = arith.cmpf ogt, %35, %43 : vector<1x128xf32>
      %45 = arith.select %44, %10, %8 : vector<1x128xi1>, vector<1x128xf32>
      %46 = arith.mulf %42, %45 : vector<1x128xf32>
      %cst_23 = arith.constant dense<0.000000e+00> : vector<128xf32>
      %47 = vector.multi_reduction <add>, %46, %cst_23 [0] : vector<1x128xf32> to vector<128xf32>
      %48 = vector.shape_cast %47 : vector<128xf32> to vector<1x128xf32>
      %49 = arith.addf %26, %48 : vector<1x128xf32>
      %50 = arith.addf %25, %49 : vector<1x128xf32>
      %c0_24 = arith.constant 0 : index
      %c0_25 = arith.constant 0 : index
      %c0_26 = arith.constant 0 : index
      %51 = vector.load %arg5[%c0_24, %c0_25, %c0_26] : memref<1x1x128xf32, #tpu.memory_space<vmem>>, vector<1x1x128xf32>
      %52 = vector.shape_cast %51 : vector<1x1x128xf32> to vector<1x128xf32>
      %53 = vector.shape_cast %50 : vector<1x128xf32> to vector<1x1x128xf32>
      tpu.vector_store %arg5[%c0_24, %c0_25, %c0_26], %53 {strides = array<i32>} : memref<1x1x128xf32, #tpu.memory_space<vmem>>, vector<1x1x128xf32>,
    } else {
    }
    %c0_i32_7 = arith.constant 0 : i32
    %19 = arith.cmpi sgt, %15, %c0_i32_7 : i32
    %c1_i32_8 = arith.constant 1 : i32
    %20 = arith.cmpi slt, %15, %c1_i32_8 : i32
    %21 = arith.andi %19, %20 : i1
    %22 = arith.extui %21 : i1 to i32
    %c0_i32_9 = arith.constant 0 : i32
    %23 = arith.cmpi ne, %22, %c0_i32_9 : i32
    scf.if %23 {
      %c0_10 = arith.constant 0 : index
      %c0_11 = arith.constant 0 : index
      %c0_12 = arith.constant 0 : index
      %24 = vector.load %arg5[%c0_10, %c0_11, %c0_12] : memref<1x1x128xf32, #tpu.memory_space<vmem>>, vector<1x1x128xf32>
      %25 = vector.shape_cast %24 : vector<1x1x128xf32> to vector<1x128xf32>
      %cst_13 = arith.constant 0.000000e+00 : f32
      %26 = vector.broadcast %cst_13 : f32 to vector<1x128xf32>
      %c0_14 = arith.constant 0 : index
      %c0_15 = arith.constant 0 : index
      %27 = vector.load %arg2[%c0_14, %c0_15] : memref<1x128xf32, #tpu.memory_space<vmem>>, vector<1x128xf32>
      %c0_16 = arith.constant 0 : index
      %c0_17 = arith.constant 0 : index
      %28 = vector.load %arg3[%c0_16, %c0_17] : memref<1x16xf32, #tpu.memory_space<vmem>>, vector<1x16xf32>
      %29 = arith.truncf %28 : vector<1x16xf32> to vector<1x16xbf16>
      %30 = arith.extf %29 : vector<1x16xbf16> to vector<1x16xf32>
      %31 = arith.subf %28, %30 : vector<1x16xf32>
      %cst_18 = arith.constant dense<0.000000e+00> : vector<1x128xf32>
      %32 = tpu.matmul %30, %11, %cst_18 {dimension_numbers = #tpu.dot_dimension_numbers<[1], [0], [0], [1], [0, 0, 1, 1], [], []>} : vector<1x16xf32>, vector<16x128xf32>, vector<1x128xf32> -> vector<1x128xf32>
      %cst_19 = arith.constant dense<0.000000e+00> : vector<1x128xf32>
      %33 = tpu.matmul %31, %11, %cst_19 {dimension_numbers = #tpu.dot_dimension_numbers<[1], [0], [0], [1], [0, 0, 1, 1], [], []>} : vector<1x16xf32>, vector<16x128xf32>, vector<1x128xf32> -> vector<1x128xf32>
      %34 = arith.addf %32, %33 : vector<1x128xf32>
      %35 = arith.subf %34, %27 : vector<1x128xf32>
      %36 = math.absf %35 : vector<1x128xf32>
      %cst_20 = arith.constant 1.000000e+00 : f32
      %37 = vector.broadcast %cst_20 : f32 to vector<1x128xf32>
      %38 = arith.minimumf %36, %37 : vector<1x128xf32>
      %cst_21 = arith.constant 5.000000e-01 : f32
      %39 = vector.broadcast %cst_21 : f32 to vector<1x128xf32>
      %40 = arith.mulf %39, %38 : vector<1x128xf32>
      %41 = arith.subf %36, %40 : vector<1x128xf32>
      %42 = arith.mulf %38, %41 : vector<1x128xf32>
      %cst_22 = arith.constant 0.000000e+00 : f32
      %43 = vector.broadcast %cst_22 : f32 to vector<1x128xf32>
      %44 = arith.cmpf ogt, %35, %43 : vector<1x128xf32>
      %45 = arith.select %44, %10, %8 : vector<1x128xi1>, vector<1x128xf32>
      %46 = arith.mulf %42, %45 : vector<1x128xf32>
      %47 = tpu.iota {dimensions = array<i32: 0>} : vector<1x1xi32>
      %c0_i32_23 = arith.constant 0 : i32
      %48 = vector.broadcast %c0_i32_23 : i32 to vector<1x1xi32>
      %49 = arith.addi %47, %48 : vector<1x1xi32>
      %50 = vector.broadcast %15 : i32 to vector<1x1xi32>
      %51 = arith.cmpi slt, %49, %50 : vector<1x1xi32>
      %cst_24 = arith.constant 0.000000e+00 : f32
      %52 = vector.shape_cast %51 : vector<1x1xi1> to vector<1x1xi1>
      %53 = vector.broadcast %52 : vector<1x1xi1> to vector<1x128xi1>
      %54 = vector.broadcast %cst_24 : f32 to vector<1x128xf32>
      %55 = arith.select %53, %46, %54 : vector<1x128xi1>, vector<1x128xf32>
      %cst_25 = arith.constant dense<0.000000e+00> : vector<128xf32>
      %56 = vector.multi_reduction <add>, %55, %cst_25 [0] : vector<1x128xf32> to vector<128xf32>
      %57 = vector.shape_cast %56 : vector<128xf32> to vector<1x128xf32>
      %58 = arith.addf %26, %57 : vector<1x128xf32>
      %59 = arith.addf %25, %58 : vector<1x128xf32>
      %c0_26 = arith.constant 0 : index
      %c0_27 = arith.constant 0 : index
      %c0_28 = arith.constant 0 : index
      %60 = vector.load %arg5[%c0_26, %c0_27, %c0_28] : memref<1x1x128xf32, #tpu.memory_space<vmem>>, vector<1x1x128xf32>
      %61 = vector.shape_cast %60 : vector<1x1x128xf32> to vector<1x128xf32>
      %62 = vector.shape_cast %59 : vector<1x128xf32> to vector<1x1x128xf32>
      tpu.vector_store %arg5[%c0_26, %c0_27, %c0_28], %62 {strides = array<i32>} : memref<1x1x128xf32, #tpu.memory_space<vmem>>, vector<1x1x128xf32>,
    } else {
    }
    return
  }
  func.func @transform_0(%arg0: i32, %arg1: i32) -> (i32, i32) {
    %c1_i32 = arith.constant 1 : i32
    %0 = arith.muli %arg0, %c1_i32 : i32
    %1 = arith.addi %0, %arg1 : i32
    %c0_i32 = arith.constant 0 : i32
    %2 = arith.minsi %1, %c0_i32 : i32
    %c0_i32_0 = arith.constant 0 : i32
    %c0_i32_1 = arith.constant 0 : i32
    return %2, %c0_i32_0 : i32, i32
  }
  func.func @transform_1(%arg0: i32, %arg1: i32) -> (i32, i32) {
    %c1_i32 = arith.constant 1 : i32
    %0 = arith.muli %arg0, %c1_i32 : i32
    %1 = arith.addi %0, %arg1 : i32
    %c0_i32 = arith.constant 0 : i32
    %2 = arith.minsi %1, %c0_i32 : i32
    %c0_i32_0 = arith.constant 0 : i32
    %c0_i32_1 = arith.constant 0 : i32
    return %2, %c0_i32_0 : i32, i32
  }
  func.func @transform_2(%arg0: i32, %arg1: i32) -> (i32, i32) {
    %c0_i32 = arith.constant 0 : i32
    %c0_i32_0 = arith.constant 0 : i32
    %c0_i32_1 = arith.constant 0 : i32
    return %c0_i32, %c0_i32_0 : i32, i32
  }
  func.func @transform_3(%arg0: i32, %arg1: i32) -> (i32, i32, i32) {
    %c0_i32 = arith.constant 0 : i32
    %c0_i32_0 = arith.constant 0 : i32
    %c0_i32_1 = arith.constant 0 : i32
    return %arg0, %c0_i32, %c0_i32_0 : i32, i32, i32
  }
}

</mosaic_0001>

<bundles_post_ra>
// kernel: tpu_custom_call.1
= control target key start
LH: loop header
LB: loop body
LE: loop exit
PB: predicated region body
PF: predicated region fallthrough
CT: control target
= control target key end

     0   :  { %8 = vsyncpa [#allocation3], 0  ;;  %s644_s0 = inlined_call_operand.hbm [shape: f32[1,128], index: 0, kind: input, shape index: {}]   ;;  %s645_s1 = inlined_call_operand.vmem [shape: f32[1,16], index: 1, kind: input, shape index: {}]   ;;  %s646_s2 = inlined_call_operand.hbm [shape: f32[16,128], index: 2, kind: input, shape index: {}]   ;;  %s647_s3 = inlined_call_operand.hbm [shape: f32[1,1,128], index: 3, kind: output, shape index: {}]  }
   0x1   :  { %9 = vsyncpa [#allocation6], 0 }
   0x2   :  { %10 = vsyncpa [#allocation4], 0  ;;  %s570_s12 = smov [#allocation2]   ;;  %s571_s14 = smov [#allocation5]  }
   0x3   :  { %s22_s13 = sshll.u32 %s570_s12, 4  ;;  %s42_s15 = sshll.u32 %s571_s14, 4  ;;  %s23_s13 = int_to_ptr.vmem [resolvable:$true] %s22_s13  ;;  %s598_s15 = int_to_ptr.vmem [resolvable:$true] %s42_s15 }
   0x4   :  { %s498_s18 = scalar_lea.hbm %s644_s0, 16 }
   0x5   :  { %p499_p0 = scmp.ne.s32.totalorder %s644_s0, %s498_s18  ;;  %p502_p1 = scmp.lt.u32.totalorder %s498_s18, %s644_s0 }
   0x7   :  { %p504_p2 = pnand %p502_p1, %p499_p0 }
   0x9   :  { %507 = shalt.err (!%p504_p2)
}
   0xa   :  { %s508_s23 = scalar_lea.vmem %s23_s13, 16  ;;  %s512_s24 = scalar_lea.vmem %s23_s13, 32 }
   0xb   :  { %p509_p3 = scmp.ne.s32.totalorder %s23_s13, %s508_s23  ;;  %p513_p4 = scmp.lt.s32.totalorder %s23_s13, %s23_s13 }
   0xc   :  { %p514_p5 = scmp.lt.s32.totalorder %s512_s24, %s508_s23 }
   0xe   :  { %p515_p6 = por %p514_p5, %p513_p4 }
  0x10   :  { %p516_p7 = pnand %p515_p6, %p509_p3 }
  0x12   :  { %519 = shalt.err (!%p516_p7)
}
  0x13   :  { %25 = dma.hbm_to_vmem [thread:$0]  %s644_s0, 16, %s23_s13, [#allocation3]  }
  0x14   :  { %s520_s29 = scalar_lea.hbm %s646_s2, 256 }
  0x15   :  { %p521_p8 = scmp.ne.s32.totalorder %s646_s2, %s520_s29  ;;  %p524_p9 = scmp.lt.u32.totalorder %s520_s29, %s646_s2 }
  0x17   :  { %p526_p10 = pnand %p524_p9, %p521_p8 }
  0x19   :  { %529 = shalt.err (!%p526_p10)
}
  0x1a   :  { %s530_s7 = scalar_lea.vmem %s598_s15, 256  ;;  %p535_p12 = scmp.lt.s32.totalorder %s598_s15, %s598_s15 }
  0x1b   :  { %p531_p11 = scmp.ne.s32.totalorder %s598_s15, %s530_s7  ;;  %p536_p13 = scmp.lt.s32.totalorder %s530_s7, %s530_s7 }
  0x1d   :  { %p537_p0 = por %p536_p13, %p535_p12 }
  0x1f   :  { %p538_p1 = pnand %p537_p0, %p531_p11 }
  0x21   :  { %541 = shalt.err (!%p538_p1)
}
  0x22   :  { %s572_s0 = smov 128   ;;  %s573_s8 = smov 8  }
  0x23   :  { %48 = dma.hbm_to_vmem [thread:$0]  %s646_s2, 256, %s598_s15, [#allocation6], %s572_s0, %s572_s0, %s573_s8  }
  0x24   :  { %564 = dma.done.wait [#allocation3], 16  }
  0x25   :  { %565 = vsyncadd [#allocation3], 4294967280 }
  0x26   :  { %566 = dma.done.wait [#allocation6], 256  }
  0x27   :  { %567 = vsyncadd [#allocation6], 4294967040  ;;  %v574_v0 = vmov 0.0|0.0   ;;  %v575_v1 = vmov 0.0   ;;  %vm576_vm0 = vmmov 0   ;;  %v85_v2 = vld [vmem:[#allocation5] sm:$0xff]  ;;  %v78_v9 = vlaneseq }
  0x28   :  { %486 = vmatprep.subr.bf16.mxu0 %v574_v0  ;;  %483 = vmatprep.subr.bf16.mxu1 %v574_v0  ;;  %77 = vst [vmem:[#allocation7] sm:$0x1] %v575_v1  ;;  %v86_v3 = vld [vmem:[#allocation5 + $0x8] sm:$0xff]  ;;  %v95_v4 = vld [vmem:[%s645_s1] sm:$0x1]  ;;  %vm99_vm1 = vcmask 130048  }
  0x29   :  { %480 = vmatprep.mubr.msk.f32.mxu0 %vm576_vm0, %v575_v1  ;;  %473 = vmatprep.mubr.msk.f32.mxu1 %vm576_vm0, %v575_v1  ;;  %v484_v5 = vpack.c.bf16 %v86_v3, %v85_v2  ;;  %v96_v6 = vpack.c.bf16 %v95_v4, %v95_v4  ;;  %v79_v10 = vand.u32 127, %v78_v9  ;;  %v94_v14 = vld [vmem:[#allocation2] sm:$0x1]  ;;  %s577_s1 = smov [#allocation7]  }
  0x2a   :  { %s444_s2 = sshll.u32 %s577_s1, 4  ;;  %s445_s2 = int_to_ptr.vmem [resolvable:$true] %s444_s2 }
  0x2b   :  { %488 = vmatpush3.bf16.msra.mxu0 %v484_v5  ;;  %485 = vmatpush3.bf16.msra.mxu1 %v484_v5  ;;  %v97_v7 = vunpack.c.l.bf16 %v96_v6  ;;  %v80_v11 = vcvt.s32.f32 %v79_v10  ;;  %s542_s13 = scalar_lea.vmem %s445_s2, 16  ;;  %s546_s14 = scalar_lea.vmem %s445_s2, 32 }
  0x2c   :  { %p543_p2 = scmp.ne.s32.totalorder %s445_s2, %s542_s13  ;;  %p547_p3 = scmp.lt.s32.totalorder %s445_s2, %s445_s2 }
  0x2d   :  { %v98_v8 = vsub.f32 %v95_v4, %v97_v7  ;;  %v81_v12 = vmul.f32 0.125, %v80_v11  ;;  %p548_p4 = scmp.lt.s32.totalorder %s546_s14, %s542_s13 }
  0x2e   :  { %481 = vmatmul.mubr.msk.f32.vlgmr.msra.gmra.mrb[0].mxu0 %vm99_vm1, %v97_v7 }
  0x2f   :  { %474 = vmatmul.mubr.msk.f32.vlgmr.msra.gmra.mrb[0].mxu1 %vm99_vm1, %v98_v8  ;;  %v82_v19 = vfloor.f32 %v81_v12  ;;  %v93_v29 = vld [vmem:[#allocation7] sm:$0x1]  ;;  %p549_p5 = por %p548_p4, %p547_p3 }
  0x31   :  { %v83_v22 = vsub.f32 %v81_v12, %v82_v19  ;;  %p550_p6 = pnand %p549_p5, %p543_p2 }
  0x33   :  { %v84_v25 = vsub.f32 1.0, %v83_v22 }
 0x101   :  { %v242_v13 = vpop.f32.mrb[0].mxu0 }
 0x102   :  { %v169_v15 = vpop.f32.mrb[0].mxu1  ;;  %v482_v16 = vpop.f32.mrb[1].mxu0 }
 0x103   :  { %v243_v17 = vadd.f32 %v242_v13, %v169_v15  ;;  %v475_v18 = vpop.f32.mrb[1].mxu1 }
 0x105   :  { %v246_v20 = vsub.f32 %v243_v17, %v94_v14 }
 0x107   :  { %v247_v21 = vand.u32 2147483647, %v246_v20  ;;  %vm252_vm2 = vcmp.gt.f32.partialorder %v246_v20, 0.0 }
 0x108   :  { %v253_v28 = vsel %vm252_vm2, %v84_v25, %v83_v22 }
 0x109   :  { %v248_v23 = vmin.f32 %v247_v21, 1.0 }
 0x10b   :  { %v249_v24 = vmul.f32 0.5, %v248_v23 }
 0x10d   :  { %v250_v26 = vsub.f32 %v247_v21, %v249_v24 }
 0x10f   :  { %v251_v27 = vmul.f32 %v250_v26, %v248_v23 }
 0x111   :  { %v254_v30 = vmul.f32 %v253_v28, %v251_v27 }
 0x113   :  { %v257_v31 = vadd.f32 %v254_v30, %v93_v29 }
 0x115   :  { %258 = vst [vmem:[#allocation7] sm:$0x1] %v257_v31 }
 0x116   :  { %553 = shalt.err (!%p550_p6)
}
 0x117   :  { %s554_s17 = scalar_lea.hbm %s647_s3, 16 }
 0x118   :  { %p555_p7 = scmp.ne.s32.totalorder %s647_s3, %s554_s17  ;;  %p558_p8 = scmp.lt.u32.totalorder %s554_s17, %s647_s3 }
 0x11a   :  { %p560_p9 = pnand %p558_p8, %p555_p7 }
 0x11c   :  { %563 = shalt.err (!%p560_p9)
}
 0x11d   :  { %447 = dma.vmem_to_hbm [thread:$0]  %s445_s2, 16, %s647_s3, [#allocation4]  }
 0x11e   :  { %568 = dma.done.wait [#allocation4], 16  }
 0x11f   :  { %569 = vsyncadd [#allocation4], 4294967280 }
 0x120   :  { %451 = vsyncpa [#allocation3], 1 }
 0x121   :  { %452 = vsyncpa [#allocation6], 1 }
 0x122   :  { %453 = vsyncpa [#allocation4], 1 }

</bundles_post_ra>
